<compile_context>
chip_gen: v5e
topology: v5e:2x2
jax: 0.10.0
libtpu: 0.0.40
codegen_flags: <defaults>
</compile_context>

<pallas_src>
import math
import jax
import jax.numpy as jnp
from jax.experimental import pallas as pl
from jax.experimental.pallas import tpu as pltpu

LN_EPS = 1e-5
LRELU_SLOPE = 0.01


# ----------------------------------------------------------------------------
# helpers
# ----------------------------------------------------------------------------
def _round_up(x, m):
    return ((x + m - 1) // m) * m


def _ln_lrelu(y, gamma, beta):
    """LayerNorm (last axis) + LeakyReLU(0.01); statistics kept in f32."""
    mean = jnp.mean(y, axis=-1, keepdims=True)
    var = jnp.mean(jnp.square(y - mean), axis=-1, keepdims=True)
    y = (y - mean) * jax.lax.rsqrt(var + LN_EPS)
    y = y * gamma + beta
    return jnp.where(y >= 0.0, y, LRELU_SLOPE * y)


def _pick_tile(out_dim):
    """Output-tile width: lane-dense, multiple of 128 when possible."""
    if out_dim <= 512:
        return out_dim
    for t in (512, 384, 256, 128):
        if out_dim % t == 0:
            return t
    return 256  # ragged last tile; Pallas masks the boundary block


# ----------------------------------------------------------------------------
# One-time kernel: encoder_pos branch (batch-invariant R/Z grid) -> (1, half)
# contribution through the connector rows.  Runs once at setup, cached.
# ----------------------------------------------------------------------------
def _pos_contrib_kernel(rz_ref, wp_ref, bp_ref, gp_ref, betap_ref, wcp_ref, o_ref):
    pos = _ln_lrelu(
        jnp.dot(rz_ref[...], wp_ref[...], preferred_element_type=jnp.float32)
        + bp_ref[...],
        gp_ref[...], betap_ref[...])                                  # (1, hidden)
    o_ref[...] = jnp.dot(pos, wcp_ref[...], preferred_element_type=jnp.float32)


# ----------------------------------------------------------------------------
# Fused per-call forward kernel (N-tiled over nx*ny)
# ----------------------------------------------------------------------------
def _build_forward_kernel(sum_in, hdims, sum_hid, half, w1_dtype,
                          r_wc, r_w0, vec_layout):
    def kernel(x_ref, vec_ref, wsm_ref, w1_ref, b1_ref, o_ref, xh_ref):
        def vec(name):
            off, width = vec_layout[name]
            return vec_ref[:, off:off + width]

        # ---- prefix (headers -> connector -> decoder[0]) once, into scratch
        @pl.when(pl.program_id(0) == 0)
        def _():
            # all headers as ONE block-diagonal matmul
            h = jnp.dot(x_ref[...], wsm_ref[0:sum_in, 0:sum_hid],
                        preferred_element_type=jnp.float32) + vec("b_hdr")
            # per-header LayerNorm (statistics over each header's own width)
            segs, off = [], 0
            for hdim in hdims:
                seg = h[:, off:off + hdim]
                mean = jnp.mean(seg, axis=-1, keepdims=True)
                var = jnp.mean(jnp.square(seg - mean), axis=-1, keepdims=True)
                segs.append((seg - mean) * jax.lax.rsqrt(var + LN_EPS))
                off += hdim
            h = segs[0] if len(segs) == 1 else jnp.concatenate(segs, axis=-1)
            h = h * vec("g_hdr") + vec("beta_hdr")
            h = jnp.where(h >= 0.0, h, LRELU_SLOPE * h)

            # connector: concat(feats) @ Wc == headers@Wc[:sum_hid] + cached pos row
            y = (jnp.dot(h, wsm_ref[r_wc:r_wc + sum_hid, 0:half],
                         preferred_element_type=jnp.float32)
                 + vec("pos") + vec("bc"))
            y = _ln_lrelu(y, vec("gc"), vec("betac"))

            # decoder[0]: Linear -> LayerNorm -> LeakyReLU
            y = _ln_lrelu(
                jnp.dot(y, wsm_ref[r_w0:r_w0 + half, 0:half],
                        preferred_element_type=jnp.float32) + vec("b0"),
                vec("g0"), vec("beta0"))
            xh_ref[...] = y

        # ---- decoder[-1] on this output tile + clamp / nan_to_num
        x = xh_ref[...].astype(w1_dtype)          # tiny (B_pad, half) cast
        psi = jnp.dot(x, w1_ref[...],
                      preferred_element_type=jnp.float32) + b1_ref[...]
        psi = jnp.clip(psi, -10.0, 10.0)          # also maps +/-inf -> +/-10
        psi = jnp.where(jnp.isnan(psi), 0.0, psi)
        o_ref[...] = psi.astype(o_ref.dtype)

    return kernel


# ----------------------------------------------------------------------------
# Parameter construction (deterministic, synthetic) — mirrors the nn.Module
# ----------------------------------------------------------------------------
def _make_linear_ln(key, fan_in, fan_out):
    kw, kb = jax.random.split(key)
    bound = 1.0 / math.sqrt(fan_in)
    w = jax.random.uniform(kw, (fan_in, fan_out), jnp.float32, -bound, bound)
    b = jax.random.uniform(kb, (1, fan_out), jnp.float32, -bound, bound)
    gamma = jnp.ones((1, fan_out), jnp.float32)
    beta = jnp.zeros((1, fan_out), jnp.float32)
    return {"w": w, "b": b, "gamma": gamma, "beta": beta}


def init_flux_generator_params(key, config, hidden_dim, nx, ny):
    params = {"headers": {}}
    keys = jax.random.split(key, len(config) + 4)
    it = iter(keys)

    for name, cfg in config.items():
        params["headers"][name] = _make_linear_ln(
            next(it), cfg["num_input"], cfg["hidden_dim"])

    params["encoder_pos"] = _make_linear_ln(next(it), 2 * nx * ny, hidden_dim)

    cat_dim = sum(cfg["hidden_dim"] for cfg in config.values()) + hidden_dim
    half = cat_dim // 2
    params["connector"] = _make_linear_ln(next(it), cat_dim, half)
    params["decoder0"] = _make_linear_ln(next(it), half, half)

    kdw, kdb = jax.random.split(next(it))
    bound = 1.0 / math.sqrt(half)
    params["decoder1"] = {
        "w": jax.random.uniform(kdw, (half, nx * ny), jnp.float32, -bound, bound),
        "b": jax.random.uniform(kdb, (1, nx * ny), jnp.float32, -bound, bound),
    }
    return params


# ----------------------------------------------------------------------------
# Setup: pack operands, cache the encoder_pos contribution
# ----------------------------------------------------------------------------
def pack_flux_params(params, rz_flat, config, hidden_dim, nx, ny,
                     w1_dtype=jnp.bfloat16):
    names = tuple(config.keys())
    hdims = tuple(config[n]["hidden_dim"] for n in names)
    in_dims = tuple(config[n]["num_input"] for n in names)
    sum_in, sum_hid = sum(in_dims), sum(hdims)
    half = (sum_hid + hidden_dim) // 2

    # --- one-time encoder_pos branch (R/Z grid is a fixed module buffer) -----
    rz = rz_flat.reshape(1, -1).astype(jnp.float32)
    ep = params["encoder_pos"]
    wc = params["connector"]["w"]
    pos_bytes = 4 * (rz.size + ep["w"].size + hidden_dim * half + 4 * hidden_dim)
    # TODO(synk): if 2*nx*ny*hidden_dim grows past ~48 MiB (v7x VMEM budget),
    # tile this one-time kernel over the K dimension as well.
    pos_contrib = pl.pallas_call(
        _pos_contrib_kernel,
        out_shape=jax.ShapeDtypeStruct((1, half), jnp.float32),
        compiler_params=pltpu.CompilerParams(
            vmem_limit_bytes=int(min(max(2 * pos_bytes, 4 << 20), 60 << 20))),
    )(rz, ep["w"], ep["b"], ep["gamma"], ep["beta"], wc[sum_hid:, :])

    # --- block-diagonal header weight + concatenated affine rows -------------
    w_hdr = jnp.zeros((sum_in, sum_hid), jnp.float32)
    b_hdr = jnp.zeros((1, sum_hid), jnp.float32)
    g_hdr = jnp.zeros((1, sum_hid), jnp.float32)
    beta_hdr = jnp.zeros((1, sum_hid), jnp.float32)
    ro = co = 0
    for n, di, dh in zip(names, in_dims, hdims):
        p = params["headers"][n]
        w_hdr = w_hdr.at[ro:ro + di, co:co + dh].set(p["w"])
        b_hdr = b_hdr.at[:, co:co + dh].set(p["b"])
        g_hdr = g_hdr.at[:, co:co + dh].set(p["gamma"])
        beta_hdr = beta_hdr.at[:, co:co + dh].set(p["beta"])
        ro += di
        co += dh

    # --- pack the three small weights into one slab (rows 8-aligned) ---------
    r_wc = _round_up(sum_in, 8)
    r_w0 = _round_up(r_wc + sum_hid, 8)
    rows = _round_up(r_w0 + half, 8)
    cols = _round_up(max(sum_hid, half), 128)
    w_small = jnp.zeros((rows, cols), jnp.float32)
    w_small = w_small.at[0:sum_in, 0:sum_hid].set(w_hdr)
    w_small = w_small.at[r_wc:r_wc + sum_hid, 0:half].set(wc[:sum_hid, :])
    w_small = w_small.at[r_w0:r_w0 + half, 0:half].set(params["decoder0"]["w"])

    # --- pack every (1, n) row vector into ONE lane-aligned operand ----------
    row_vecs = [
        ("b_hdr", b_hdr), ("g_hdr", g_hdr), ("beta_hdr", beta_hdr),
        ("bc", params["connector"]["b"]),
        ("gc", params["connector"]["gamma"]),
        ("betac", params["connector"]["beta"]),
        ("b0", params["decoder0"]["b"]),
        ("g0", params["decoder0"]["gamma"]),
        ("beta0", params["decoder0"]["beta"]),
        ("pos", pos_contrib),
    ]
    vec_layout, off = {}, 0
    for name, arr in row_vecs:
        vec_layout[name] = (off, int(arr.shape[1]))
        off = _round_up(off + int(arr.shape[1]), 128)
    vec_pack = jnp.zeros((1, off), jnp.float32)
    for name, arr in row_vecs:
        o, w = vec_layout[name]
        vec_pack = vec_pack.at[:, o:o + w].set(arr)

    packed = {
        "vec": vec_pack,
        "w_small": w_small,
        "w1": params["decoder1"]["w"].astype(w1_dtype),   # bf16: halves bytes
        "b1": params["decoder1"]["b"].astype(jnp.float32),
    }
    meta = dict(names=names, hdims=hdims, sum_in=sum_in, sum_hid=sum_hid,
                half=half, r_wc=r_wc, r_w0=r_w0, vec_layout=vec_layout,
                w1_dtype=w1_dtype)
    return packed, meta


# ----------------------------------------------------------------------------
# Forward builder: returns a jitted fn(packed, *header_inputs) -> (B, nx, ny)
# ----------------------------------------------------------------------------
def build_flux_forward(meta, nx, ny):
    hdims = meta["hdims"]
    sum_in, sum_hid, half = meta["sum_in"], meta["sum_hid"], meta["half"]
    out_dim = nx * ny
    tn = _pick_tile(out_dim)
    num_tiles = pl.cdiv(out_dim, tn)
    w1_bytes = jnp.dtype(meta["w1_dtype"]).itemsize

    kernel = _build_forward_kernel(sum_in, hdims, sum_hid, half,
                                   meta["w1_dtype"], meta["r_wc"],
                                   meta["r_w0"], meta["vec_layout"])

    @jax.jit
    def forward(packed, *xs):
        x_cat = jnp.concatenate([x.astype(jnp.float32) for x in xs], axis=1)
        b = x_cat.shape[0]
        b_pad = _round_up(max(b, 8), 8)        # unmasked full-sublane stores
        if b_pad != b:
            x_cat = jnp.pad(x_cat, ((0, b_pad - b), (0, 0)))

        vec_w = packed["vec"].shape[1]
        wsm_shape = packed["w_small"].shape
        resident = 4 * (b_pad * sum_in + vec_w
                        + wsm_shape[0] * wsm_shape[1] + b_pad * half)
        streamed = 2 * (half * tn * w1_bytes + 4 * tn + 4 * b_pad * tn)
        vmem_limit = int(min(max(2 * (resident + streamed), 4 << 20), 60 << 20))

        grid_spec = pltpu.PrefetchScalarGridSpec(
            num_scalar_prefetch=0,
            grid=(num_tiles,),
            in_specs=[
                pl.BlockSpec((b_pad, sum_in), lambda j: (0, 0)),   # DMA'd once
                pl.BlockSpec((1, vec_w), lambda j: (0, 0)),        # DMA'd once
                pl.BlockSpec(wsm_shape, lambda j: (0, 0)),         # DMA'd once
                pl.BlockSpec((half, tn), lambda j: (0, j)),        # streamed
                pl.BlockSpec((1, tn), lambda j: (0, j)),           # streamed
            ],
            out_specs=pl.BlockSpec((b_pad, tn), lambda j: (0, j)),
            scratch_shapes=[pltpu.VMEM((b_pad, half), jnp.float32)],
        )
        psi = pl.pallas_call(
            kernel,
            out_shape=jax.ShapeDtypeStruct((b_pad, out_dim), jnp.float32),
            grid_spec=grid_spec,
            # TODO(synk): to use both v7x TensorCores, split the j==0 prefix
            # into its own call so this axis can be marked "parallel"; with
            # the resident scratch carry it must stay "arbitrary" here.
            compiler_params=pltpu.CompilerParams(
                dimension_semantics=("arbitrary",),
                vmem_limit_bytes=vmem_limit),
        )(x_cat, packed["vec"], packed["w_small"], packed["w1"], packed["b1"])
        return psi[:b].reshape(b, nx, ny)

    return forward


# ----------------------------------------------------------------------------
if __name__ == "__main__":
    B = 2
    nx = ny = 16
    hidden_dim = 32
    config = {
        "x_params": {"num_input": 8, "hidden_dim": 16},
        "x_PFCs":   {"num_input": 10, "hidden_dim": 16},
    }

    # Deterministic R/Z grids (fixed module buffers, as in the reference)
    r1d = jnp.linspace(1.0, 2.5, nx, dtype=jnp.float32)
    z1d = jnp.linspace(-1.0, 1.0, ny, dtype=jnp.float32)
    R2D = jnp.tile(r1d[None, :], (ny, 1))
    Z2D = jnp.tile(z1d[:, None], (1, nx))
    rz_flat = jnp.concatenate([R2D.reshape(-1), Z2D.reshape(-1)], axis=0)

    key = jax.random.PRNGKey(0)
    kparam, kd0, kd1 = jax.random.split(key, 3)
    params = init_flux_generator_params(kparam, config, hidden_dim, nx, ny)

    # Setup (amortized): pack operands + cache the encoder_pos contribution
    packed, meta = pack_flux_params(params, rz_flat, config, hidden_dim, nx, ny)
    forward = build_flux_forward(meta, nx, ny)

    data = {
        "x_params": jax.random.normal(kd0, (B, 8), jnp.float32),
        "x_PFCs":   jax.random.normal(kd1, (B, 10), jnp.float32),
    }

    psi = forward(packed, *[data[n] for n in meta["names"]])
    psi = jax.block_until_ready(psi)

    assert psi.shape == (B, nx, ny)
    assert bool(jnp.all(jnp.isfinite(psi)))
    assert bool(jnp.all(psi <= 10.0)) and bool(jnp.all(psi >= -10.0))
    print("KERNEL_OK")
</pallas_src>

<mosaic_0001>
module attributes {stable_mosaic.version = 11 : i64} {
  func.func @_pos_contrib_kernel(%arg0: memref<1x512xf32, #tpu.memory_space<vmem>>, %arg1: memref<512x32xf32, #tpu.memory_space<vmem>>, %arg2: memref<1x32xf32, #tpu.memory_space<vmem>>, %arg3: memref<1x32xf32, #tpu.memory_space<vmem>>, %arg4: memref<1x32xf32, #tpu.memory_space<vmem>>, %arg5: memref<32x32xf32, #tpu.memory_space<vmem>>, %arg6: memref<1x32xf32, #tpu.memory_space<vmem>>) attributes {dimension_semantics = [], scalar_prefetch = 0 : i64, scratch_operands = 0 : i64, tpu.core_type = #tpu.core_type<tc>} {
    %c0 = arith.constant 0 : index
    %c0_0 = arith.constant 0 : index
    %0 = vector.load %arg0[%c0, %c0_0] : memref<1x512xf32, #tpu.memory_space<vmem>>, vector<1x512xf32>
    %c0_1 = arith.constant 0 : index
    %c0_2 = arith.constant 0 : index
    %1 = vector.load %arg1[%c0_1, %c0_2] : memref<512x32xf32, #tpu.memory_space<vmem>>, vector<512x32xf32>
    %cst = arith.constant dense<0.000000e+00> : vector<1x32xf32>
    %2 = tpu.matmul %0, %1, %cst {dimension_numbers = #tpu.dot_dimension_numbers<[1], [0], [0], [1], [0, 0, 1, 1], [], []>} : vector<1x512xf32>, vector<512x32xf32>, vector<1x32xf32> -> vector<1x32xf32>
    %c0_3 = arith.constant 0 : index
    %c0_4 = arith.constant 0 : index
    %3 = vector.load %arg2[%c0_3, %c0_4] : memref<1x32xf32, #tpu.memory_space<vmem>>, vector<1x32xf32>
    %4 = arith.addf %2, %3 : vector<1x32xf32>
    %c0_5 = arith.constant 0 : index
    %c0_6 = arith.constant 0 : index
    %5 = vector.load %arg3[%c0_5, %c0_6] : memref<1x32xf32, #tpu.memory_space<vmem>>, vector<1x32xf32>
    %c0_7 = arith.constant 0 : index
    %c0_8 = arith.constant 0 : index
    %6 = vector.load %arg4[%c0_7, %c0_8] : memref<1x32xf32, #tpu.memory_space<vmem>>, vector<1x32xf32>
    %cst_9 = arith.constant dense<0.000000e+00> : vector<1xf32>
    %7 = vector.multi_reduction <add>, %4, %cst_9 [1] : vector<1x32xf32> to vector<1xf32>
    %8 = vector.shape_cast %7 : vector<1xf32> to vector<1x1xf32>
    %cst_10 = arith.constant 3.200000e+01 : f32
    %9 = vector.broadcast %cst_10 : f32 to vector<1x1xf32>
    %10 = arith.divf %8, %9 : vector<1x1xf32>
    %11 = vector.broadcast %10 : vector<1x1xf32> to vector<1x32xf32>
    %12 = arith.subf %4, %11 : vector<1x32xf32>
    %13 = arith.mulf %12, %12 : vector<1x32xf32>
    %cst_11 = arith.constant dense<0.000000e+00> : vector<1xf32>
    %14 = vector.multi_reduction <add>, %13, %cst_11 [1] : vector<1x32xf32> to vector<1xf32>
    %15 = vector.shape_cast %14 : vector<1xf32> to vector<1x1xf32>
    %cst_12 = arith.constant 3.200000e+01 : f32
    %16 = vector.broadcast %cst_12 : f32 to vector<1x1xf32>
    %17 = arith.divf %15, %16 : vector<1x1xf32>
    %18 = vector.broadcast %10 : vector<1x1xf32> to vector<1x32xf32>
    %19 = arith.subf %4, %18 : vector<1x32xf32>
    %cst_13 = arith.constant 9.99999974E-6 : f32
    %20 = vector.broadcast %cst_13 : f32 to vector<1x1xf32>
    %21 = arith.addf %17, %20 : vector<1x1xf32>
    %22 = math.rsqrt %21 : vector<1x1xf32>
    %23 = vector.broadcast %22 : vector<1x1xf32> to vector<1x32xf32>
    %24 = arith.mulf %19, %23 : vector<1x32xf32>
    %25 = arith.mulf %24, %5 : vector<1x32xf32>
    %26 = arith.addf %25, %6 : vector<1x32xf32>
    %cst_14 = arith.constant 0.000000e+00 : f32
    %27 = vector.broadcast %cst_14 : f32 to vector<1x32xf32>
    %28 = arith.cmpf oge, %26, %27 : vector<1x32xf32>
    %cst_15 = arith.constant 0.00999999977 : f32
    %29 = vector.broadcast %cst_15 : f32 to vector<1x32xf32>
    %30 = arith.mulf %29, %26 : vector<1x32xf32>
    %31 = arith.select %28, %26, %30 : vector<1x32xi1>, vector<1x32xf32>
    %c0_16 = arith.constant 0 : index
    %c0_17 = arith.constant 0 : index
    %32 = vector.load %arg5[%c0_16, %c0_17] : memref<32x32xf32, #tpu.memory_space<vmem>>, vector<32x32xf32>
    %cst_18 = arith.constant dense<0.000000e+00> : vector<1x32xf32>
    %33 = tpu.matmul %31, %32, %cst_18 {dimension_numbers = #tpu.dot_dimension_numbers<[1], [0], [0], [1], [0, 0, 1, 1], [], []>} : vector<1x32xf32>, vector<32x32xf32>, vector<1x32xf32> -> vector<1x32xf32>
    %c0_19 = arith.constant 0 : index
    %c0_20 = arith.constant 0 : index
    %34 = vector.load %arg6[%c0_19, %c0_20] : memref<1x32xf32, #tpu.memory_space<vmem>>, vector<1x32xf32>
    tpu.vector_store %arg6[%c0_19, %c0_20], %33 {strides = array<i32>} : memref<1x32xf32, #tpu.memory_space<vmem>>, vector<1x32xf32>,
    return
  }
}

</mosaic_0001>

<bundles_post_ra>
// kernel: tpu_custom_call.1
= control target key start
LH: loop header
LB: loop body
LE: loop exit
PB: predicated region body
PF: predicated region fallthrough
CT: control target
= control target key end

     0   :  { %s553_s0 = inlined_call_operand.vmem [shape: f32[1,512], index: 0, kind: input, shape index: {}]   ;;  %s554_s1 = inlined_call_operand.vmem [shape: f32[512,32], index: 1, kind: input, shape index: {}]   ;;  %s555_s2 = inlined_call_operand.vmem [shape: f32[1,32], index: 2, kind: input, shape index: {}]   ;;  %s556_s3 = inlined_call_operand.vmem [shape: f32[1,32], index: 3, kind: input, shape index: {}]   ;;  %s557_s4 = inlined_call_operand.vmem [shape: f32[1,32], index: 4, kind: input, shape index: {}]   ;;  %s558_s5 = inlined_call_operand.vmem [shape: f32[32,32], index: 5, kind: input, shape index: {}]   ;;  %s559_s6 = inlined_call_operand.hbm [shape: f32[1,32], index: 6, kind: output, shape index: {}]  }
   0x1   :  { %v72_v0 = vld [vmem:[%s554_s1 + $0x178] sm:$0xff]  ;;  %v71_v2 = vld [vmem:[%s554_s1 + $0x170] sm:$0xff]  ;;  %v70_v6 = vld [vmem:[%s554_s1 + $0x168] sm:$0xff] }
   0x2   :  { %v40_v1 = vld [vmem:[%s554_s1 + $0x78] sm:$0xff]  ;;  %139 = vmatpush.msra.mxu2 %v72_v0  ;;  %v39_v4 = vld [vmem:[%s554_s1 + $0x70] sm:$0xff]  ;;  %v38_v8 = vld [vmem:[%s554_s1 + $0x68] sm:$0xff] }
   0x3   :  { %99 = vmatpush.msra.mxu0 %v40_v1  ;;  %v88_v3 = vld [vmem:[%s554_s1 + $0x1f8] sm:$0xff]  ;;  %v87_v7 = vld [vmem:[%s554_s1 + $0x1f0] sm:$0xff]  ;;  %v86_v10 = vld [vmem:[%s554_s1 + $0x1e8] sm:$0xff] }
   0x4   :  { %v56_v5 = vld [vmem:[%s554_s1 + $0xf8] sm:$0xff]  ;;  %159 = vmatpush.msra.mxu3 %v88_v3  ;;  %140 = vmatpush.msra.mxu2 %v71_v2  ;;  %v55_v9 = vld [vmem:[%s554_s1 + $0xf0] sm:$0xff]  ;;  %v69_v11 = vld [vmem:[%s554_s1 + $0x160] sm:$0xff] }
   0x5   :  { %119 = vmatpush.msra.mxu1 %v56_v5  ;;  %100 = vmatpush.msra.mxu0 %v39_v4  ;;  %v37_v12 = vld [vmem:[%s554_s1 + $0x60] sm:$0xff]  ;;  %v54_v13 = vld [vmem:[%s554_s1 + $0xe8] sm:$0xff]  ;;  %v68_v16 = vld [vmem:[%s554_s1 + $0x158] sm:$0xff] }
   0x6   :  { %160 = vmatpush.msra.mxu3 %v87_v7  ;;  %141 = vmatpush.msra.mxu2 %v70_v6  ;;  %v85_v14 = vld [vmem:[%s554_s1 + $0x1e0] sm:$0xff]  ;;  %v36_v17 = vld [vmem:[%s554_s1 + $0x58] sm:$0xff]  ;;  %v67_v20 = vld [vmem:[%s554_s1 + $0x150] sm:$0xff] }
   0x7   :  { %120 = vmatpush.msra.mxu1 %v55_v9  ;;  %101 = vmatpush.msra.mxu0 %v38_v8  ;;  %v53_v15 = vld [vmem:[%s554_s1 + $0xe0] sm:$0xff]  ;;  %v84_v18 = vld [vmem:[%s554_s1 + $0x1d8] sm:$0xff]  ;;  %v35_v21 = vld [vmem:[%s554_s1 + $0x50] sm:$0xff] }
   0x8   :  { %161 = vmatpush.msra.mxu3 %v86_v10  ;;  %142 = vmatpush.msra.mxu2 %v69_v11  ;;  %v52_v19 = vld [vmem:[%s554_s1 + $0xd8] sm:$0xff]  ;;  %v83_v22 = vld [vmem:[%s554_s1 + $0x1d0] sm:$0xff]  ;;  %v66_v24 = vld [vmem:[%s554_s1 + $0x148] sm:$0xff] }
   0x9   :  { %121 = vmatpush.msra.mxu1 %v54_v13  ;;  %102 = vmatpush.msra.mxu0 %v37_v12  ;;  %v51_v23 = vld [vmem:[%s554_s1 + $0xd0] sm:$0xff]  ;;  %v34_v25 = vld [vmem:[%s554_s1 + $0x48] sm:$0xff]  ;;  %v65_v28 = vld [vmem:[%s554_s1 + $0x140] sm:$0xff] }
   0xa   :  { %162 = vmatpush.msra.mxu3 %v85_v14  ;;  %143 = vmatpush.msra.mxu2 %v68_v16  ;;  %v82_v26 = vld [vmem:[%s554_s1 + $0x1c8] sm:$0xff]  ;;  %v33_v29 = vld [vmem:[%s554_s1 + $0x40] sm:$0xff]  ;;  %v64_v32 = vld [vmem:[%s554_s1 + $0x138] sm:$0xff] }
   0xb   :  { %122 = vmatpush.msra.mxu1 %v53_v15  ;;  %103 = vmatpush.msra.mxu0 %v36_v17  ;;  %v50_v27 = vld [vmem:[%s554_s1 + $0xc8] sm:$0xff]  ;;  %v81_v30 = vld [vmem:[%s554_s1 + $0x1c0] sm:$0xff]  ;;  %v32_v33 = vld [vmem:[%s554_s1 + $0x38] sm:$0xff] }
   0xc   :  { %163 = vmatpush.msra.mxu3 %v84_v18  ;;  %144 = vmatpush.msra.mxu2 %v67_v20  ;;  %v49_v31 = vld [vmem:[%s554_s1 + $0xc0] sm:$0xff]  ;;  %v80_v34 = vld [vmem:[%s554_s1 + $0x1b8] sm:$0xff]  ;;  %v63_v36 = vld [vmem:[%s554_s1 + $0x130] sm:$0xff] }
   0xd   :  { %123 = vmatpush.msra.mxu1 %v52_v19  ;;  %104 = vmatpush.msra.mxu0 %v35_v21  ;;  %v48_v35 = vld [vmem:[%s554_s1 + $0xb8] sm:$0xff]  ;;  %v31_v37 = vld [vmem:[%s554_s1 + $0x30] sm:$0xff]  ;;  %v62_v40 = vld [vmem:[%s554_s1 + $0x128] sm:$0xff] }
   0xe   :  { %164 = vmatpush.msra.mxu3 %v83_v22  ;;  %145 = vmatpush.msra.mxu2 %v66_v24  ;;  %v79_v38 = vld [vmem:[%s554_s1 + $0x1b0] sm:$0xff]  ;;  %v30_v41 = vld [vmem:[%s554_s1 + $0x28] sm:$0xff]  ;;  %v61_v44 = vld [vmem:[%s554_s1 + $0x120] sm:$0xff] }
   0xf   :  { %124 = vmatpush.msra.mxu1 %v51_v23  ;;  %105 = vmatpush.msra.mxu0 %v34_v25  ;;  %v47_v39 = vld [vmem:[%s554_s1 + $0xb0] sm:$0xff]  ;;  %v78_v42 = vld [vmem:[%s554_s1 + $0x1a8] sm:$0xff]  ;;  %v29_v45 = vld [vmem:[%s554_s1 + $0x20] sm:$0xff] }
  0x10   :  { %165 = vmatpush.msra.mxu3 %v82_v26  ;;  %146 = vmatpush.msra.mxu2 %v65_v28  ;;  %v46_v43 = vld [vmem:[%s554_s1 + $0xa8] sm:$0xff]  ;;  %v77_v46 = vld [vmem:[%s554_s1 + $0x1a0] sm:$0xff]  ;;  %v60_v48 = vld [vmem:[%s554_s1 + $0x118] sm:$0xff] }
  0x11   :  { %125 = vmatpush.msra.mxu1 %v50_v27  ;;  %106 = vmatpush.msra.mxu0 %v33_v29  ;;  %v45_v47 = vld [vmem:[%s554_s1 + $0xa0] sm:$0xff]  ;;  %v28_v49 = vld [vmem:[%s554_s1 + $0x18] sm:$0xff] }
  0x12   :  { %166 = vmatpush.msra.mxu3 %v81_v30  ;;  %147 = vmatpush.msra.mxu2 %v64_v32 }
  0x13   :  { %126 = vmatpush.msra.mxu1 %v49_v31  ;;  %107 = vmatpush.msra.mxu0 %v32_v33 }
  0x14   :  { %167 = vmatpush.msra.mxu3 %v80_v34  ;;  %148 = vmatpush.msra.mxu2 %v63_v36 }
  0x15   :  { %127 = vmatpush.msra.mxu1 %v48_v35  ;;  %108 = vmatpush.msra.mxu0 %v31_v37 }
  0x16   :  { %168 = vmatpush.msra.mxu3 %v79_v38  ;;  %149 = vmatpush.msra.mxu2 %v62_v40 }
  0x17   :  { %128 = vmatpush.msra.mxu1 %v47_v39  ;;  %109 = vmatpush.msra.mxu0 %v30_v41 }
  0x18   :  { %169 = vmatpush.msra.mxu3 %v78_v42 }
  0x19   :  { %129 = vmatpush.msra.mxu1 %v46_v43 }
  0x1a   :  { %11 = vsyncpa [#allocation3], 0  ;;  %150 = vmatpush.msra.mxu2 %v61_v44  ;;  %110 = vmatpush.msra.mxu0 %v29_v45  ;;  %v76_v50 = vld [vmem:[%s554_s1 + $0x198] sm:$0xff]  ;;  %v59_v52 = vld [vmem:[%s554_s1 + $0x110] sm:$0xff]  ;;  %vm181_vm0 = vcmask 253952   ;;  %v294_v15 = vmov 32.0  }
  0x1b   :  { %v44_v51 = vld [vmem:[%s554_s1 + $0x98] sm:$0xff]  ;;  %170 = vmatpush.msra.mxu3 %v77_v46  ;;  %130 = vmatpush.msra.mxu1 %v45_v47  ;;  %v27_v53 = vld [vmem:[%s554_s1 + $0x10] sm:$0xff]  ;;  %v24_v56 = vld [vmem:[%s553_s0] sm:$0xf]  ;;  %264 = vrcp.f32 %v294_v15  ;;  %vm220_vm6 = vcmask 261120   ;;  %s295_s17 = smov [#allocation2]  }
  0x1c   :  { %151 = vmatpush.msra.mxu2 %v60_v48  ;;  %111 = vmatpush.msra.mxu0 %v28_v49  ;;  %v75_v54 = vld [vmem:[%s554_s1 + $0x190] sm:$0xff]  ;;  %v58_v57 = vld [vmem:[%s554_s1 + $0x108] sm:$0xff]  ;;  %v57_v61 = vld [vmem:[%s554_s1 + $0x100] sm:$0xff]  ;;  %v93_v62 = vperm.slane %v24_v56, 2  ;;  %v91_v1 = vperm.slane %v24_v56, 0  ;;  %v94_v2 = vperm.slane %v24_v56, 3 }
  0x1d   :  { %v43_v55 = vld [vmem:[%s554_s1 + $0x90] sm:$0xff]  ;;  %171 = vmatpush.msra.mxu3 %v76_v50  ;;  %131 = vmatpush.msra.mxu1 %v44_v51  ;;  %v26_v58 = vld [vmem:[%s554_s1 + $0x8] sm:$0xff]  ;;  %v25_v63 = vld [vmem:[%s554_s1] sm:$0xff]  ;;  %v92_v4 = vperm.slane %v24_v56, 1  ;;  %s250_s18 = sshll.u32 %s295_s17, 4  ;;  %s252_s21 = sshll.u32 %s559_s6, 4  ;;  %s251_s18 = int_to_ptr.vmem [resolvable:$true] %s250_s18  ;;  %s253_s21 = int_to_ptr.hbm [resolvable:$true] %s252_s21 }
  0x1e   :  { %152 = vmatpush.msra.mxu2 %v59_v52  ;;  %112 = vmatpush.msra.mxu0 %v27_v53  ;;  %v74_v59 = vld [vmem:[%s554_s1 + $0x188] sm:$0xff]  ;;  %v73_v0 = vld [vmem:[%s554_s1 + $0x180] sm:$0xff]  ;;  %v219_v27 = vld [vmem:[%s558_s5 + $0x18] sm:$0xff] }
  0x1f   :  { %v42_v60 = vld [vmem:[%s554_s1 + $0x88] sm:$0xff]  ;;  %172 = vmatpush.msra.mxu3 %v75_v54  ;;  %132 = vmatpush.msra.mxu1 %v43_v55  ;;  %v41_v3 = vld [vmem:[%s554_s1 + $0x80] sm:$0xff]  ;;  %v218_v28 = vld [vmem:[%s558_s5 + $0x10] sm:$0xff] }
  0x20   :  { %153 = vmatpush.msra.mxu2 %v58_v57  ;;  %113 = vmatpush.msra.mxu0 %v26_v58  ;;  %v89_v5 = vld [vmem:[%s555_s2] sm:$0x1]  ;;  %v217_v29 = vld [vmem:[%s558_s5 + $0x8] sm:$0xff] }
  0x21   :  { %173 = vmatpush.msra.mxu3 %v74_v59  ;;  %133 = vmatpush.msra.mxu1 %v42_v60  ;;  %v265_v16 = vpop.eup %264  ;;  %v216_v30 = vld [vmem:[%s558_s5] sm:$0xff] }
  0x22   :  { %154 = vmatpush.msra.mxu2 %v57_v61  ;;  %114 = vmatpush.msra.mxu0 %v25_v63  ;;  %v186_v17 = vmul.f32 32.0, %v265_v16  ;;  %vm190_vm1 = vweird.f32 %v265_v16  ;;  %v179_v41 = vld [vmem:[%s556_s3] sm:$0x1] }
  0x23   :  { %155 = vmatmul.f32.vlgmr.msra.gmra.mxu2 %v93_v62  ;;  %174 = vmatpush.msra.mxu3 %v73_v0  ;;  %v180_v43 = vld [vmem:[%s557_s4] sm:$0x1] }
  0x24   :  { %115 = vmatmul.f32.vlgmr.msra.gmra.mxu0 %v91_v1  ;;  %175 = vmatmul.f32.vlgmr.msra.gmra.mxu3 %v94_v2  ;;  %v187_v18 = vsub.f32 1.0, %v186_v17 }
  0x25   :  { %134 = vmatpush.msra.mxu1 %v41_v3  ;;  %236 = vmatpush.msrb.mxu0 %v219_v27 }
  0x26   :  { %135 = vmatmul.f32.vlgmr.msra.gmra.mxu1 %v92_v4  ;;  %v188_v19 = vmul.f32 %v265_v16, %v187_v18 }
  0x27   :  { %237 = vmatpush.msrb.mxu0 %v218_v28 }
  0x28   :  { %v189_v20 = vadd.f32 %v265_v16, %v188_v19 }
  0x29   :  { %238 = vmatpush.msrb.mxu0 %v217_v29 }
  0x2a   :  { %v191_v21 = vsel %vm190_vm1, %v265_v16, %v189_v20 }
  0x2b   :  { %239 = vmatpush.msrb.mxu0 %v216_v30 }
  0xa1   :  { %v116_v6 = vpop.f32.mrf.mxu0 }
  0xa2   :  { %v117_v7 = vadd.f32 %v116_v6, %v89_v5 }
  0xa3   :  { %v136_v8 = vpop.f32.mrf.mxu1 }
  0xa4   :  { %v137_v9 = vadd.f32 %v136_v8, %v117_v7 }
  0xa6   :  { %v156_v10 = vpop.f32.mrf.mxu2 }
  0xa7   :  { %v157_v11 = vadd.f32 %v156_v10, %v137_v9  ;;  %v176_v12 = vpop.f32.mrf.mxu3 }
  0xa9   :  { %v177_v13 = vadd.f32 %v176_v12, %v157_v11 }
  0xab   :  { %v182_v14 = vsel %vm181_vm0, %v177_v13, 0.0 }
  0xac   :  { %183 = vadd.xlane.f32.xlu0 %v182_v14 }
 0x11f   :  { %v184_v22 = vpop.xlane.xlu0 %183 }
 0x120   :  { %v192_v23 = vmul.f32 %v191_v21, %v184_v22 }
 0x122   :  { %v193_v24 = vsub.f32 %v177_v13, %v192_v23 }
 0x124   :  { %v194_v25 = vmul.f32 %v193_v24, %v193_v24 }
 0x126   :  { %v195_v26 = vsel %vm181_vm0, %v194_v25, 0.0 }
 0x127   :  { %196 = vadd.xlane.f32.xlu0 %v195_v26 }
 0x19a   :  { %v197_v31 = vpop.xlane.xlu0 %196 }
 0x19b   :  { %v198_v32 = vmul.f32 %v197_v31, %v191_v21 }
 0x19d   :  { %v199_v33 = vadd.f32 1e-05, %v198_v32 }
 0x19f   :  { %266 = vrsqrt.f32 %v199_v33  ;;  %vm206_vm3 = vweird.f32 %v199_v33 }
 0x1a5   :  { %v267_v34 = vpop.eup %266 }
 0x1a6   :  { %v201_v35 = vmul.f32 %v267_v34, %v199_v33  ;;  %vm207_vm2 = vweird.f32 %v267_v34 }
 0x1a7   :  { %vm208_vm4 = vmor %vm206_vm3, %vm207_vm2 }
 0x1a8   :  { %v202_v36 = vmul.f32 %v267_v34, %v201_v35 }
 0x1aa   :  { %v203_v37 = vmul.f32 0.5, %v202_v36 }
 0x1ac   :  { %v204_v38 = vsub.f32 1.5, %v203_v37 }
 0x1ae   :  { %v205_v39 = vmul.f32 %v267_v34, %v204_v38 }
 0x1b0   :  { %v209_v40 = vsel %vm208_vm4, %v267_v34, %v205_v39 }
 0x1b1   :  { %v210_v42 = vmul.f32 %v209_v40, %v193_v24 }
 0x1b3   :  { %v211_v44 = vmul.f32 %v210_v42, %v179_v41 }
 0x1b5   :  { %v212_v45 = vadd.f32 %v211_v44, %v180_v43 }
 0x1b7   :  { %vm213_vm5 = vcmp.ge.f32.partialorder %v212_v45, 0.0  ;;  %v214_v46 = vmul.f32 0.01, %v212_v45 }
 0x1b9   :  { %v215_v47 = vsel %vm213_vm5, %v212_v45, %v214_v46 }
 0x1ba   :  { %261 = vmatmul.msk.f32.vlgmr.msrb.gmra.mxu0 %vm220_vm6, %v215_v47 }
 0x237   :  { %v241_v48 = vpop.f32.mrf.mxu0 }
 0x238   :  { %244 = vst.msk [vmem:[#allocation2] sm:$0x1] %vm181_vm0, %v241_v48 }
 0x239   :  { %255 = dma.vmem_to_hbm [thread:$0]  %s251_s18, 16, %s253_s21, [#allocation3]  }
 0x23a   :  { %292 = dma.done.wait [#allocation3], 16  }
 0x23b   :  { %293 = vsyncadd [#allocation3], 4294967280 }
 0x23c   :  { %260 = vsyncpa [#allocation3], 1 }

</bundles_post_ra>
